<compile_context>
chip_gen: v7x
topology: tpu7x:2x2x1
jax: 0.10.0
libtpu: 0.0.40
codegen_flags: <defaults>
</compile_context>

<pallas_src>
import math
from functools import partial

import jax
import jax.numpy as jnp
from jax import lax
from jax.experimental import pallas as pl
from jax.experimental.pallas import tpu as pltpu

# Row-slab layout: 11 bias/param rows followed by H head-spread rows.
(_R_BK1, _R_BK2, _R_BV1, _R_BV2, _R_BQ, _R_BK, _R_BV, _R_BO,
 _R_LNG, _R_LNB, _R_FCW) = range(11)
_N_BIAS_ROWS = 11
# Weight-slab layout: 8 stacked (E, E) matrices.
(_W_K1, _W_K2, _W_V1, _W_V2, _W_Q, _W_K, _W_V, _W_O) = range(8)


# ----------------------------- fused Pallas kernel ---------------------------

def _fused_forward_kernel(
    i_ref,        # (1, 1, E)   item embedding (MHA query), one item per grid step
    u_ref,        # (Nu, E)     user embeddings (shared, VMEM-resident)
    d_ref,        # (1, Ld, E)  desc_inputs  (key1)
    c_ref,        # (1, Lc, E)  comment_inputs (key2)
    w_ref,        # (8E, E)     packed weight slab (resident)
    rows_ref,     # (11+H, E)   packed bias / ln / fc rows + head-spread matrix
    bias_ref,     # (1, 1, Nu)  fc.bias + item_bias + user_bias + global_bias, per item
    scores_ref,   # (1, 1, Nu)  output scores  (== (fc(I_deep*U)+biases).T)
    ideep_ref,    # (1, 1, E)   output I_deep = I + LayerNorm(attn_out)
    *, num_heads,
):
    f32 = jnp.float32
    E = u_ref.shape[-1]
    H = num_heads
    Dh = E // H
    scale = 1.0 / math.sqrt(Dh)

    def mm(x, w):
        return jnp.dot(x, w, preferred_element_type=f32)

    def mm_nt(x, y):                       # x @ y.T
        return lax.dot_general(x, y, (((1,), (1,)), ((), ())),
                               preferred_element_type=f32)

    def w(i):                              # static (E, E) slice of the weight slab
        return w_ref[i * E:(i + 1) * E, :]

    rows = rows_ref[...]                   # (11+H, E), ~one vreg pair
    def row(i):
        return rows[i:i + 1, :]            # (1, E)

    spread = rows[_N_BIAS_ROWS:_N_BIAS_ROWS + H, :]   # (H, E): 1 on head h's lanes

    q_row = i_ref[0]                       # (1, E)
    d = d_ref[0]                           # (Ld, E)
    c = c_ref[0]                           # (Lc, E)

    # --- CustomAttentionModel projections (key1->wk1, key2->wk2, then wv on them)
    k1 = mm(d, w(_W_K1)) + row(_R_BK1)                 # (Ld, E)
    k2 = mm(c, w(_W_K2)) + row(_R_BK2)                 # (Lc, E)
    v1 = mm(k1, w(_W_V1)) + row(_R_BV1)                # (Ld, E)
    v2 = mm(k2, w(_W_V2)) + row(_R_BV2)                # (Lc, E)
    keys = jnp.concatenate([k1, k2], axis=0)           # (S, E)
    vals = jnp.concatenate([v1, v2], axis=0)           # (S, E)

    # --- MultiheadAttention in-projections (softmax scale folded into q) ------
    q_p = (mm(q_row, w(_W_Q)) + row(_R_BQ)) * scale    # (1, E)
    k_p = mm(keys, w(_W_K)) + row(_R_BK)               # (S, E)
    v_p = mm(vals, w(_W_V)) + row(_R_BV)               # (S, E)

    # --- all heads at once via the head-pooling matrix -------------------------
    # logits[s, h] = sum_{e in head h} q_p[0, e] * k_p[s, e]
    s = mm_nt(k_p * q_p, spread)                       # (S, H)
    m = jnp.max(s, axis=0, keepdims=True)              # (1, H)
    p = jnp.exp(s - m)                                 # (S, H)
    l = jnp.sum(p, axis=0, keepdims=True)              # (1, H)
    p = p / l                                          # exact softmax (parity)
    # out[0, e] = sum_s softmax[s, head(e)] * v_p[s, e]
    o = jnp.sum(mm(p, spread) * v_p, axis=0, keepdims=True)   # (1, E)
    attn = mm(o, w(_W_O)) + row(_R_BO)                 # (1, E) single out-proj matmul

    # --- LayerNorm(eps=1e-6, affine) + residual --------------------------------
    mean = jnp.mean(attn, axis=-1, keepdims=True)
    cen = attn - mean
    var = jnp.mean(cen * cen, axis=-1, keepdims=True)
    ln = cen * lax.rsqrt(var + 1e-6) * row(_R_LNG) + row(_R_LNB)
    i_deep = q_row + ln                                # (1, E)
    ideep_ref[0] = i_deep

    # --- score head: (fc(I_deep * U) + b_i + b_u + mu).T  ->  (1, Nu) ----------
    s_u = mm_nt(i_deep * row(_R_FCW), u_ref[...])      # (1, Nu)
    scores_ref[0] = s_u + bias_ref[0]


# ------------------------------ params / packing ------------------------------

def init_params(key, n_item, n_user, n_dim):
    E = n_dim
    ks = jax.random.split(key, 13)

    def xavier_uniform(k, shape, fan_in, fan_out):
        a = math.sqrt(6.0 / (fan_in + fan_out))
        return jax.random.uniform(k, shape, jnp.float32, -a, a)

    def xavier_normal(k):
        std = math.sqrt(2.0 / (E + E))
        return jax.random.normal(k, (E, E), jnp.float32) * std

    z_row = jnp.zeros((1, E), jnp.float32)
    return {
        # embeddings
        "item_emb": xavier_uniform(ks[0], (n_item, E), n_item, E),
        "user_emb": xavier_uniform(ks[1], (n_user, E), n_user, E),
        "item_bias": jax.random.normal(ks[2], (n_item, 1), jnp.float32),
        "user_bias": jax.random.normal(ks[3], (n_user, 1), jnp.float32),
        "global_bias": jnp.zeros((1, 1), jnp.float32),
        # CustomAttentionModel linears (xavier_normal weights, zero bias)
        "wk1_w": xavier_normal(ks[4]), "wk1_b": z_row,
        "wk2_w": xavier_normal(ks[5]), "wk2_b": z_row,
        "wv1_w": xavier_normal(ks[6]), "wv1_b": z_row,
        "wv2_w": xavier_normal(ks[7]), "wv2_b": z_row,
        # nn.MultiheadAttention in/out projections (stored as (in, out))
        "wq_in": xavier_uniform(ks[8], (E, E), E, E), "bq_in": z_row,
        "wk_in": xavier_uniform(ks[9], (E, E), E, E), "bk_in": z_row,
        "wv_in": xavier_uniform(ks[10], (E, E), E, E), "bv_in": z_row,
        "wo": xavier_uniform(ks[11], (E, E), E, E), "bo": z_row,
        # LayerNorm(elementwise_affine=True)
        "ln_g": jnp.ones((1, E), jnp.float32), "ln_b": z_row,
        # fc: Linear(E, 1)
        "fc_w": xavier_uniform(ks[12], (1, E), E, 1),
        "fc_b": jnp.zeros((1, 1), jnp.float32),
    }


def pack_params(params, *, num_heads):
    """One-time packing of all small operands into two lane-dense slabs."""
    E = params["item_emb"].shape[1]
    Dh = E // num_heads
    w_slab = jnp.concatenate(
        [params["wk1_w"], params["wk2_w"], params["wv1_w"], params["wv2_w"],
         params["wq_in"], params["wk_in"], params["wv_in"], params["wo"]],
        axis=0)                                                        # (8E, E)
    spread = jnp.repeat(jnp.eye(num_heads, dtype=jnp.float32), Dh, axis=1)  # (H, E)
    rows = jnp.concatenate(
        [params["wk1_b"], params["wk2_b"], params["wv1_b"], params["wv2_b"],
         params["bq_in"], params["bk_in"], params["bv_in"], params["bo"],
         params["ln_g"], params["ln_b"], params["fc_w"], spread],
        axis=0)                                                        # (11+H, E)
    return {
        "w_slab": w_slab, "rows": rows,
        "item_emb": params["item_emb"], "user_emb": params["user_emb"],
        "item_bias": params["item_bias"], "user_bias": params["user_bias"],
        "fc_b": params["fc_b"], "global_bias": params["global_bias"],
    }


# ------------------------------ model wrapper ---------------------------------

def semantic_latent_lite_forward(packed, item_deep_emb, item_ids, user_ids,
                                 desc_inputs, comment_inputs, *, num_heads):
    """Batched forward: B independent requests (item, desc, comment) against a
    shared user batch.  Row b of `scores` equals the original module's
    (fc(I_deep*U)+b_i+b_u+mu).T output for item b."""
    E = packed["item_emb"].shape[1]
    assert E % num_heads == 0, "embed_dim must be divisible by num_heads"
    B = item_ids.shape[0]
    Nu = user_ids.shape[0]
    Ld = desc_inputs.shape[-2]
    Lc = comment_inputs.shape[-2]
    nrows = packed["rows"].shape[0]

    # Embedding gathers: pure memory lookups, done in plain JAX.
    I = packed["item_emb"][item_ids][:, None, :]                 # (B, 1, E)
    U = packed["user_emb"][user_ids]                             # (Nu, E)
    b_i = packed["item_bias"][item_ids]                          # (B, 1)
    b_u = packed["user_bias"][user_ids].reshape(1, Nu)           # (1, Nu)
    # All scalar biases folded into one per-item lane-dense row.
    bias = (b_i + b_u + packed["fc_b"] + packed["global_bias"])[:, None, :]  # (B,1,Nu)

    scores, i_deep = pl.pallas_call(
        partial(_fused_forward_kernel, num_heads=num_heads),
        grid=(B,),
        in_specs=[
            pl.BlockSpec((1, 1, E), lambda b: (b, 0, 0)),        # I
            pl.BlockSpec((Nu, E), lambda b: (0, 0)),             # U (resident)
            pl.BlockSpec((1, Ld, E), lambda b: (b, 0, 0)),       # desc
            pl.BlockSpec((1, Lc, E), lambda b: (b, 0, 0)),       # comments
            pl.BlockSpec((8 * E, E), lambda b: (0, 0)),          # weight slab (resident)
            pl.BlockSpec((nrows, E), lambda b: (0, 0)),          # row slab (resident)
            pl.BlockSpec((1, 1, Nu), lambda b: (b, 0, 0)),       # folded biases
        ],
        out_specs=(
            pl.BlockSpec((1, 1, Nu), lambda b: (b, 0, 0)),       # scores (lane-dense)
            pl.BlockSpec((1, 1, E), lambda b: (b, 0, 0)),        # I_deep
        ),
        out_shape=(jax.ShapeDtypeStruct((B, 1, Nu), jnp.float32),
                   jax.ShapeDtypeStruct((B, 1, E), jnp.float32)),
        compiler_params=pltpu.CompilerParams(
            dimension_semantics=("parallel",)),                  # 2nd TC on v7x
    )(I, U, desc_inputs, comment_inputs, packed["w_slab"], packed["rows"], bias)

    scores = scores[:, 0, :]                                     # (B, Nu)
    # TODO(synk): torch does an in-place buffer write `item_deep_emb.data[item_id] = I_deep`;
    # reproduced here as a functional scatter returned to the caller (last write wins on dups).
    new_item_deep_emb = item_deep_emb.at[item_ids].set(i_deep[:, 0, :])
    return scores, new_item_deep_emb


# ----------------------------------- main -------------------------------------

if __name__ == "__main__":
    N_DIM, N_HEAD = 128, 4
    N_ITEM, N_USER = 64, 256
    L_DESC, L_COMM = 16, 16
    BATCH_ITEMS, N_USERS_BATCH = 8, 128

    root = jax.random.PRNGKey(0)
    k_par, k_desc, k_comm, k_items = jax.random.split(root, 4)

    params = init_params(k_par, N_ITEM, N_USER, N_DIM)
    packed = pack_params(params, num_heads=N_HEAD)               # hoisted, once
    item_deep_emb = jnp.zeros((N_ITEM, N_DIM), jnp.float32)      # register_buffer

    item_ids = jax.random.randint(k_items, (BATCH_ITEMS,), 0, N_ITEM, dtype=jnp.int32)
    user_ids = jnp.arange(N_USERS_BATCH, dtype=jnp.int32) % N_USER
    desc_inputs = jax.random.normal(k_desc, (BATCH_ITEMS, L_DESC, N_DIM), jnp.float32)
    comment_inputs = jax.random.normal(k_comm, (BATCH_ITEMS, L_COMM, N_DIM), jnp.float32)

    fwd = jax.jit(partial(semantic_latent_lite_forward, num_heads=N_HEAD))
    scores, new_item_deep_emb = fwd(packed, item_deep_emb, item_ids, user_ids,
                                    desc_inputs, comment_inputs)
    jax.block_until_ready((scores, new_item_deep_emb))

    assert scores.shape == (BATCH_ITEMS, N_USERS_BATCH), scores.shape
    assert new_item_deep_emb.shape == (N_ITEM, N_DIM), new_item_deep_emb.shape
    assert bool(jnp.all(jnp.isfinite(scores)))
    assert bool(jnp.all(jnp.isfinite(new_item_deep_emb)))
    print("KERNEL_OK")
</pallas_src>

<mosaic_0001>
module attributes {stable_mosaic.version = 11 : i64} {
  func.func @_fused_forward_kernel(%arg0: i32, %arg1: memref<1x1x128xf32, #tpu.memory_space<vmem>>, %arg2: memref<128x128xf32, #tpu.memory_space<vmem>>, %arg3: memref<1x16x128xf32, #tpu.memory_space<vmem>>, %arg4: memref<1x16x128xf32, #tpu.memory_space<vmem>>, %arg5: memref<1024x128xf32, #tpu.memory_space<vmem>>, %arg6: memref<15x128xf32, #tpu.memory_space<vmem>>, %arg7: memref<1x1x128xf32, #tpu.memory_space<vmem>>, %arg8: memref<1x1x128xf32, #tpu.memory_space<vmem>>, %arg9: memref<1x1x128xf32, #tpu.memory_space<vmem>>) attributes {dimension_semantics = [#tpu.dimension_semantics<parallel>], iteration_bounds = array<i64: 8>, scalar_prefetch = 0 : i64, scratch_operands = 0 : i64, tpu.core_type = #tpu.core_type<tc>, window_params = [{transform_indices = @transform_0, window_bounds = array<i64: 1, 1, 128>}, {pipeline_mode = #tpu.pipeline_mode<synchronous>, transform_indices = @transform_1, window_bounds = array<i64: 128, 128>}, {transform_indices = @transform_2, window_bounds = array<i64: 1, 16, 128>}, {transform_indices = @transform_3, window_bounds = array<i64: 1, 16, 128>}, {pipeline_mode = #tpu.pipeline_mode<synchronous>, transform_indices = @transform_4, window_bounds = array<i64: 1024, 128>}, {pipeline_mode = #tpu.pipeline_mode<synchronous>, transform_indices = @transform_5, window_bounds = array<i64: 15, 128>}, {transform_indices = @transform_6, window_bounds = array<i64: 1, 1, 128>}, {transform_indices = @transform_7, window_bounds = array<i64: 1, 1, 128>}, {transform_indices = @transform_8, window_bounds = array<i64: 1, 1, 128>}]} {
    %c0 = arith.constant 0 : index
    %c0_0 = arith.constant 0 : index
    %0 = vector.load %arg6[%c0, %c0_0] : memref<15x128xf32, #tpu.memory_space<vmem>>, vector<15x128xf32>
    %1 = vector.extract_strided_slice %0 {offsets = [11, 0], sizes = [4, 128], strides = [1, 1]} : vector<15x128xf32> to vector<4x128xf32>
    %c0_1 = arith.constant 0 : index
    %c0_2 = arith.constant 0 : index
    %c0_3 = arith.constant 0 : index
    %2 = vector.load %arg1[%c0_1, %c0_2, %c0_3] : memref<1x1x128xf32, #tpu.memory_space<vmem>>, vector<1x1x128xf32>
    %3 = vector.shape_cast %2 : vector<1x1x128xf32> to vector<1x128xf32>
    %c0_4 = arith.constant 0 : index
    %c0_5 = arith.constant 0 : index
    %c0_6 = arith.constant 0 : index
    %4 = vector.load %arg3[%c0_4, %c0_5, %c0_6] : memref<1x16x128xf32, #tpu.memory_space<vmem>>, vector<1x16x128xf32>
    %5 = vector.shape_cast %4 : vector<1x16x128xf32> to vector<16x128xf32>
    %c0_7 = arith.constant 0 : index
    %c0_8 = arith.constant 0 : index
    %c0_9 = arith.constant 0 : index
    %6 = vector.load %arg4[%c0_7, %c0_8, %c0_9] : memref<1x16x128xf32, #tpu.memory_space<vmem>>, vector<1x16x128xf32>
    %7 = vector.shape_cast %6 : vector<1x16x128xf32> to vector<16x128xf32>
    %c0_10 = arith.constant 0 : index
    %c0_11 = arith.constant 0 : index
    %8 = vector.load %arg5[%c0_10, %c0_11] : memref<1024x128xf32, #tpu.memory_space<vmem>>, vector<128x128xf32>
    %cst = arith.constant dense<0.000000e+00> : vector<16x128xf32>
    %9 = tpu.matmul %5, %8, %cst {dimension_numbers = #tpu.dot_dimension_numbers<[1], [0], [0], [1], [0, 0, 1, 1], [], []>} : vector<16x128xf32>, vector<128x128xf32>, vector<16x128xf32> -> vector<16x128xf32>
    %10 = vector.extract_strided_slice %0 {offsets = [0, 0], sizes = [1, 128], strides = [1, 1]} : vector<15x128xf32> to vector<1x128xf32>
    %11 = vector.broadcast %10 : vector<1x128xf32> to vector<16x128xf32>
    %12 = arith.addf %9, %11 : vector<16x128xf32>
    %c128 = arith.constant 128 : index
    %c0_12 = arith.constant 0 : index
    %13 = vector.load %arg5[%c128, %c0_12] : memref<1024x128xf32, #tpu.memory_space<vmem>>, vector<128x128xf32>
    %cst_13 = arith.constant dense<0.000000e+00> : vector<16x128xf32>
    %14 = tpu.matmul %7, %13, %cst_13 {dimension_numbers = #tpu.dot_dimension_numbers<[1], [0], [0], [1], [0, 0, 1, 1], [], []>} : vector<16x128xf32>, vector<128x128xf32>, vector<16x128xf32> -> vector<16x128xf32>
    %15 = vector.extract_strided_slice %0 {offsets = [1, 0], sizes = [1, 128], strides = [1, 1]} : vector<15x128xf32> to vector<1x128xf32>
    %16 = vector.broadcast %15 : vector<1x128xf32> to vector<16x128xf32>
    %17 = arith.addf %14, %16 : vector<16x128xf32>
    %c256 = arith.constant 256 : index
    %c0_14 = arith.constant 0 : index
    %18 = vector.load %arg5[%c256, %c0_14] : memref<1024x128xf32, #tpu.memory_space<vmem>>, vector<128x128xf32>
    %cst_15 = arith.constant dense<0.000000e+00> : vector<16x128xf32>
    %19 = tpu.matmul %12, %18, %cst_15 {dimension_numbers = #tpu.dot_dimension_numbers<[1], [0], [0], [1], [0, 0, 1, 1], [], []>} : vector<16x128xf32>, vector<128x128xf32>, vector<16x128xf32> -> vector<16x128xf32>
    %20 = vector.extract_strided_slice %0 {offsets = [2, 0], sizes = [1, 128], strides = [1, 1]} : vector<15x128xf32> to vector<1x128xf32>
    %21 = vector.broadcast %20 : vector<1x128xf32> to vector<16x128xf32>
    %22 = arith.addf %19, %21 : vector<16x128xf32>
    %c384 = arith.constant 384 : index
    %c0_16 = arith.constant 0 : index
    %23 = vector.load %arg5[%c384, %c0_16] : memref<1024x128xf32, #tpu.memory_space<vmem>>, vector<128x128xf32>
    %cst_17 = arith.constant dense<0.000000e+00> : vector<16x128xf32>
    %24 = tpu.matmul %17, %23, %cst_17 {dimension_numbers = #tpu.dot_dimension_numbers<[1], [0], [0], [1], [0, 0, 1, 1], [], []>} : vector<16x128xf32>, vector<128x128xf32>, vector<16x128xf32> -> vector<16x128xf32>
    %25 = vector.extract_strided_slice %0 {offsets = [3, 0], sizes = [1, 128], strides = [1, 1]} : vector<15x128xf32> to vector<1x128xf32>
    %26 = vector.broadcast %25 : vector<1x128xf32> to vector<16x128xf32>
    %27 = arith.addf %24, %26 : vector<16x128xf32>
    %28 = tpu.concatenate %12, %17 in 0 : vector<16x128xf32>, vector<16x128xf32> -> vector<32x128xf32>
    %29 = tpu.concatenate %22, %27 in 0 : vector<16x128xf32>, vector<16x128xf32> -> vector<32x128xf32>
    %c512 = arith.constant 512 : index
    %c0_18 = arith.constant 0 : index
    %30 = vector.load %arg5[%c512, %c0_18] : memref<1024x128xf32, #tpu.memory_space<vmem>>, vector<128x128xf32>
    %cst_19 = arith.constant dense<0.000000e+00> : vector<1x128xf32>
    %31 = tpu.matmul %3, %30, %cst_19 {dimension_numbers = #tpu.dot_dimension_numbers<[1], [0], [0], [1], [0, 0, 1, 1], [], []>} : vector<1x128xf32>, vector<128x128xf32>, vector<1x128xf32> -> vector<1x128xf32>
    %32 = vector.extract_strided_slice %0 {offsets = [4, 0], sizes = [1, 128], strides = [1, 1]} : vector<15x128xf32> to vector<1x128xf32>
    %33 = arith.addf %31, %32 : vector<1x128xf32>
    %cst_20 = arith.constant 0.176776692 : f32
    %34 = vector.broadcast %cst_20 : f32 to vector<1x128xf32>
    %35 = arith.mulf %33, %34 : vector<1x128xf32>
    %c640 = arith.constant 640 : index
    %c0_21 = arith.constant 0 : index
    %36 = vector.load %arg5[%c640, %c0_21] : memref<1024x128xf32, #tpu.memory_space<vmem>>, vector<128x128xf32>
    %cst_22 = arith.constant dense<0.000000e+00> : vector<32x128xf32>
    %37 = tpu.matmul %28, %36, %cst_22 {dimension_numbers = #tpu.dot_dimension_numbers<[1], [0], [0], [1], [0, 0, 1, 1], [], []>} : vector<32x128xf32>, vector<128x128xf32>, vector<32x128xf32> -> vector<32x128xf32>
    %38 = vector.extract_strided_slice %0 {offsets = [5, 0], sizes = [1, 128], strides = [1, 1]} : vector<15x128xf32> to vector<1x128xf32>
    %39 = vector.broadcast %38 : vector<1x128xf32> to vector<32x128xf32>
    %40 = arith.addf %37, %39 : vector<32x128xf32>
    %c768 = arith.constant 768 : index
    %c0_23 = arith.constant 0 : index
    %41 = vector.load %arg5[%c768, %c0_23] : memref<1024x128xf32, #tpu.memory_space<vmem>>, vector<128x128xf32>
    %cst_24 = arith.constant dense<0.000000e+00> : vector<32x128xf32>
    %42 = tpu.matmul %29, %41, %cst_24 {dimension_numbers = #tpu.dot_dimension_numbers<[1], [0], [0], [1], [0, 0, 1, 1], [], []>} : vector<32x128xf32>, vector<128x128xf32>, vector<32x128xf32> -> vector<32x128xf32>
    %43 = vector.extract_strided_slice %0 {offsets = [6, 0], sizes = [1, 128], strides = [1, 1]} : vector<15x128xf32> to vector<1x128xf32>
    %44 = vector.broadcast %43 : vector<1x128xf32> to vector<32x128xf32>
    %45 = arith.addf %42, %44 : vector<32x128xf32>
    %46 = vector.broadcast %35 : vector<1x128xf32> to vector<32x128xf32>
    %47 = arith.mulf %40, %46 : vector<32x128xf32>
    %cst_25 = arith.constant dense<0.000000e+00> : vector<32x4xf32>
    %48 = tpu.matmul %47, %1, %cst_25 {dimension_numbers = #tpu.dot_dimension_numbers<[1], [1], [0], [0], [0, 0, 1, 0], [], []>} : vector<32x128xf32>, vector<4x128xf32>, vector<32x4xf32> -> vector<32x4xf32>
    %cst_26 = arith.constant dense<0xFF800000> : vector<4xf32>
    %49 = vector.multi_reduction <maximumf>, %48, %cst_26 [0] : vector<32x4xf32> to vector<4xf32>
    %50 = vector.shape_cast %49 : vector<4xf32> to vector<1x4xf32>
    %51 = vector.broadcast %50 : vector<1x4xf32> to vector<32x4xf32>
    %52 = arith.subf %48, %51 : vector<32x4xf32>
    %53 = math.exp %52 : vector<32x4xf32>
    %cst_27 = arith.constant dense<0.000000e+00> : vector<4xf32>
    %54 = vector.multi_reduction <add>, %53, %cst_27 [0] : vector<32x4xf32> to vector<4xf32>
    %55 = vector.shape_cast %54 : vector<4xf32> to vector<1x4xf32>
    %56 = vector.broadcast %55 : vector<1x4xf32> to vector<32x4xf32>
    %57 = arith.divf %53, %56 : vector<32x4xf32>
    %cst_28 = arith.constant dense<0.000000e+00> : vector<32x128xf32>
    %58 = tpu.matmul %57, %1, %cst_28 {dimension_numbers = #tpu.dot_dimension_numbers<[1], [0], [0], [1], [0, 0, 1, 1], [], []>} : vector<32x4xf32>, vector<4x128xf32>, vector<32x128xf32> -> vector<32x128xf32>
    %59 = arith.mulf %58, %45 : vector<32x128xf32>
    %cst_29 = arith.constant dense<0.000000e+00> : vector<128xf32>
    %60 = vector.multi_reduction <add>, %59, %cst_29 [0] : vector<32x128xf32> to vector<128xf32>
    %61 = vector.shape_cast %60 : vector<128xf32> to vector<1x128xf32>
    %c896 = arith.constant 896 : index
    %c0_30 = arith.constant 0 : index
    %62 = vector.load %arg5[%c896, %c0_30] : memref<1024x128xf32, #tpu.memory_space<vmem>>, vector<128x128xf32>
    %cst_31 = arith.constant dense<0.000000e+00> : vector<1x128xf32>
    %63 = tpu.matmul %61, %62, %cst_31 {dimension_numbers = #tpu.dot_dimension_numbers<[1], [0], [0], [1], [0, 0, 1, 1], [], []>} : vector<1x128xf32>, vector<128x128xf32>, vector<1x128xf32> -> vector<1x128xf32>
    %64 = vector.extract_strided_slice %0 {offsets = [7, 0], sizes = [1, 128], strides = [1, 1]} : vector<15x128xf32> to vector<1x128xf32>
    %65 = arith.addf %63, %64 : vector<1x128xf32>
    %cst_32 = arith.constant dense<0.000000e+00> : vector<1xf32>
    %66 = vector.multi_reduction <add>, %65, %cst_32 [1] : vector<1x128xf32> to vector<1xf32>
    %67 = vector.shape_cast %66 : vector<1xf32> to vector<1x1xf32>
    %cst_33 = arith.constant 1.280000e+02 : f32
    %68 = vector.broadcast %cst_33 : f32 to vector<1x1xf32>
    %69 = arith.divf %67, %68 : vector<1x1xf32>
    %70 = vector.broadcast %69 : vector<1x1xf32> to vector<1x128xf32>
    %71 = arith.subf %65, %70 : vector<1x128xf32>
    %72 = arith.mulf %71, %71 : vector<1x128xf32>
    %cst_34 = arith.constant dense<0.000000e+00> : vector<1xf32>
    %73 = vector.multi_reduction <add>, %72, %cst_34 [1] : vector<1x128xf32> to vector<1xf32>
    %74 = vector.shape_cast %73 : vector<1xf32> to vector<1x1xf32>
    %cst_35 = arith.constant 1.280000e+02 : f32
    %75 = vector.broadcast %cst_35 : f32 to vector<1x1xf32>
    %76 = arith.divf %74, %75 : vector<1x1xf32>
    %cst_36 = arith.constant 9.99999997E-7 : f32
    %77 = vector.broadcast %cst_36 : f32 to vector<1x1xf32>
    %78 = arith.addf %76, %77 : vector<1x1xf32>
    %79 = math.rsqrt %78 : vector<1x1xf32>
    %80 = vector.broadcast %79 : vector<1x1xf32> to vector<1x128xf32>
    %81 = arith.mulf %71, %80 : vector<1x128xf32>
    %82 = vector.extract_strided_slice %0 {offsets = [8, 0], sizes = [1, 128], strides = [1, 1]} : vector<15x128xf32> to vector<1x128xf32>
    %83 = arith.mulf %81, %82 : vector<1x128xf32>
    %84 = vector.extract_strided_slice %0 {offsets = [9, 0], sizes = [1, 128], strides = [1, 1]} : vector<15x128xf32> to vector<1x128xf32>
    %85 = arith.addf %83, %84 : vector<1x128xf32>
    %86 = arith.addf %3, %85 : vector<1x128xf32>
    %c0_37 = arith.constant 0 : index
    %c0_38 = arith.constant 0 : index
    %c0_39 = arith.constant 0 : index
    %87 = vector.load %arg9[%c0_37, %c0_38, %c0_39] : memref<1x1x128xf32, #tpu.memory_space<vmem>>, vector<1x1x128xf32>
    %88 = vector.shape_cast %87 : vector<1x1x128xf32> to vector<1x128xf32>
    %89 = vector.shape_cast %86 : vector<1x128xf32> to vector<1x1x128xf32>
    tpu.vector_store %arg9[%c0_37, %c0_38, %c0_39], %89 {strides = array<i32>} : memref<1x1x128xf32, #tpu.memory_space<vmem>>, vector<1x1x128xf32>,
    %90 = vector.extract_strided_slice %0 {offsets = [10, 0], sizes = [1, 128], strides = [1, 1]} : vector<15x128xf32> to vector<1x128xf32>
    %91 = arith.mulf %86, %90 : vector<1x128xf32>
    %c0_40 = arith.constant 0 : index
    %c0_41 = arith.constant 0 : index
    %92 = vector.load %arg2[%c0_40, %c0_41] : memref<128x128xf32, #tpu.memory_space<vmem>>, vector<128x128xf32>
    %cst_42 = arith.constant dense<0.000000e+00> : vector<1x128xf32>
    %93 = tpu.matmul %91, %92, %cst_42 {dimension_numbers = #tpu.dot_dimension_numbers<[1], [1], [0], [0], [0, 0, 1, 0], [], []>} : vector<1x128xf32>, vector<128x128xf32>, vector<1x128xf32> -> vector<1x128xf32>
    %c0_43 = arith.constant 0 : index
    %c0_44 = arith.constant 0 : index
    %c0_45 = arith.constant 0 : index
    %94 = vector.load %arg7[%c0_43, %c0_44, %c0_45] : memref<1x1x128xf32, #tpu.memory_space<vmem>>, vector<1x1x128xf32>
    %95 = vector.shape_cast %94 : vector<1x1x128xf32> to vector<1x128xf32>
    %96 = arith.addf %93, %95 : vector<1x128xf32>
    %c0_46 = arith.constant 0 : index
    %c0_47 = arith.constant 0 : index
    %c0_48 = arith.constant 0 : index
    %97 = vector.load %arg8[%c0_46, %c0_47, %c0_48] : memref<1x1x128xf32, #tpu.memory_space<vmem>>, vector<1x1x128xf32>
    %98 = vector.shape_cast %97 : vector<1x1x128xf32> to vector<1x128xf32>
    %99 = vector.shape_cast %96 : vector<1x128xf32> to vector<1x1x128xf32>
    tpu.vector_store %arg8[%c0_46, %c0_47, %c0_48], %99 {strides = array<i32>} : memref<1x1x128xf32, #tpu.memory_space<vmem>>, vector<1x1x128xf32>,
    return
  }
  func.func @transform_0(%arg0: i32) -> (i32, i32, i32) {
    %c0_i32 = arith.constant 0 : i32
    %c0_i32_0 = arith.constant 0 : i32
    %c0_i32_1 = arith.constant 0 : i32
    return %arg0, %c0_i32, %c0_i32_0 : i32, i32, i32
  }
  func.func @transform_1(%arg0: i32) -> (i32, i32) {
    %c0_i32 = arith.constant 0 : i32
    %c0_i32_0 = arith.constant 0 : i32
    %c0_i32_1 = arith.constant 0 : i32
    return %c0_i32, %c0_i32_0 : i32, i32
  }
  func.func @transform_2(%arg0: i32) -> (i32, i32, i32) {
    %c0_i32 = arith.constant 0 : i32
    %c0_i32_0 = arith.constant 0 : i32
    %c0_i32_1 = arith.constant 0 : i32
    return %arg0, %c0_i32, %c0_i32_0 : i32, i32, i32
  }
  func.func @transform_3(%arg0: i32) -> (i32, i32, i32) {
    %c0_i32 = arith.constant 0 : i32
    %c0_i32_0 = arith.constant 0 : i32
    %c0_i32_1 = arith.constant 0 : i32
    return %arg0, %c0_i32, %c0_i32_0 : i32, i32, i32
  }
  func.func @transform_4(%arg0: i32) -> (i32, i32) {
    %c0_i32 = arith.constant 0 : i32
    %c0_i32_0 = arith.constant 0 : i32
    %c0_i32_1 = arith.constant 0 : i32
    return %c0_i32, %c0_i32_0 : i32, i32
  }
  func.func @transform_5(%arg0: i32) -> (i32, i32) {
    %c0_i32 = arith.constant 0 : i32
    %c0_i32_0 = arith.constant 0 : i32
    %c0_i32_1 = arith.constant 0 : i32
    return %c0_i32, %c0_i32_0 : i32, i32
  }
  func.func @transform_6(%arg0: i32) -> (i32, i32, i32) {
    %c0_i32 = arith.constant 0 : i32
    %c0_i32_0 = arith.constant 0 : i32
    %c0_i32_1 = arith.constant 0 : i32
    return %arg0, %c0_i32, %c0_i32_0 : i32, i32, i32
  }
  func.func @transform_7(%arg0: i32) -> (i32, i32, i32) {
    %c0_i32 = arith.constant 0 : i32
    %c0_i32_0 = arith.constant 0 : i32
    %c0_i32_1 = arith.constant 0 : i32
    return %arg0, %c0_i32, %c0_i32_0 : i32, i32, i32
  }
  func.func @transform_8(%arg0: i32) -> (i32, i32, i32) {
    %c0_i32 = arith.constant 0 : i32
    %c0_i32_0 = arith.constant 0 : i32
    %c0_i32_1 = arith.constant 0 : i32
    return %arg0, %c0_i32, %c0_i32_0 : i32, i32, i32
  }
}

</mosaic_0001>

<bundles_post_ra>
// kernel: semantic_latent_lite_forward.1
= control target key start
LH: loop header
LB: loop body
LE: loop exit
PB: predicated region body
PF: predicated region fallthrough
CT: control target
= control target key end

     0   :  { %s3275_s0 = inlined_call_operand.vmem [shape: f32[8,1,128], index: 0, kind: input, shape index: {}]   ;;  %s3276_s1 = inlined_call_operand.vmem [shape: f32[128,128], index: 1, kind: input, shape index: {}]   ;;  %s3277_s2 = inlined_call_operand.vmem [shape: f32[8,16,128], index: 2, kind: input, shape index: {}]   ;;  %s3278_s3 = inlined_call_operand.vmem [shape: f32[8,16,128], index: 3, kind: input, shape index: {}]   ;;  %s3279_s4 = inlined_call_operand.vmem [shape: f32[1024,128], index: 4, kind: input, shape index: {}]   ;;  %s3280_s5 = inlined_call_operand.vmem [shape: f32[15,128], index: 5, kind: input, shape index: {}]   ;;  %s3281_s6 = inlined_call_operand.vmem [shape: f32[8,1,128], index: 6, kind: input, shape index: {}]   ;;  %s3282_s7 = inlined_call_operand.hbm [shape: f32[8,1,128], index: 7, kind: output, shape index: {0}]   ;;  %s3283_s8 = inlined_call_operand.vmem [shape: f32[8,1,128], index: 8, kind: output, shape index: {1}]  }
   0x1   :  { %3284 = sst [smem:[#allocation5_spill]] %s3277_s2 }
   0x2   :  { %14 = vsyncpa [#allocation3], 0 }
   0x3   :  { %16 = vsyncpa [#allocation3 + $0x1], 0  ;;  %s2598_s27 = smov 0   ;;  %s2600_s28 = smov 0  }
   0x4   :  { %s2602_s29 = smov 0   ;;  %s2604_s30 = smov 0  }
   0x5 LB: > { %s2619_s9 = sadd.s32 4294967295, %s2546_s30   ;;  %s1637_s10 = sadd.s32 4294967294, %s2546_s30   ;;  %s2546_s30 = sphi %s2604_s30, %s3291_s30   ;;  %s2542_s29 = sphi %s2602_s29, %s3290_s29   ;;  %s2538_s28 = sphi %s2600_s28, %s3289_s28   ;;  %s2534_s27 = sphi %s2598_s27, %s3288_s27  }
   0x6   : > { %s2623_s11 = sadd.s32 1, %s2546_s30   ;;  %s196_s12 = sadd.s32 1, %s2542_s29 }
   0x7   : > { %s193_s13 = ssub.s32 %s2546_s30, %s2623_s11  ;;  %p206_p0 = scmp.ne.s32.totalorder %s2542_s29, %s2538_s28 }
   0x8   : > { %p194_p1 = scmp.eq.s32.totalorder %s193_s13, 0  ;;  %p207_p2 = scmp.eq.s32.totalorder %s2619_s9, 7 }
   0x9   : > { %p212_p3 = scmp.ne.s32.totalorder %s2538_s28, %s2534_s27  ;;  %p213_p4 = scmp.eq.s32.totalorder %s1637_s10, 7 }
   0xa   : > { %s2634_s14 = scalar_select %p194_p1, %s2542_s29, %s196_s12  }
   0xb   : > { %p2636_p5 = por %p207_p2, %p206_p0  ;;  %p2640_p6 = por %p213_p4, %p212_p3 }
   0xc   : > { %p1640_p7 = scmp.ge.s32.totalorder %s2546_s30, 1  ;;  %p294_p8 = scmp.lt.s32.totalorder %s2546_s30, 9 }
   0xe   : > { %p295_p9 = pnand %p1640_p7, %p294_p8 }
   0xf   : > { %v367_v0 = vld [vmem:[%s3279_s4] sm:$0xff] (!%p295_p9)  ;;  %v368_v1 = vld [vmem:[%s3279_s4 + $0x8] sm:$0xff] (!%p295_p9)  ;;  %v369_v2 = vld [vmem:[%s3279_s4 + $0x10] sm:$0xff] (!%p295_p9)  ;;  %p341_p10 = scmp.lt.s32.totalorder (!%p295_p9), %s2619_s9, 7  ;;  %s3287_s2 = sld [smem:[#allocation5_spill]] (!%p295_p9)  ;;  %vm2549_vm0 = vmmov (!%p295_p9), 0  }
  0x10   : > { %298 = sbr.rel (%p295_p9) target bundleno = 1825 (0x721), region = 48  ;;  %v2165_v3 = vpack.c.bf16 (!%p295_p9), %v368_v1, %v367_v0  ;;  %v370_v4 = vld [vmem:[%s3279_s4 + $0x18] sm:$0xff] (!%p295_p9)  ;;  %v371_v6 = vld [vmem:[%s3279_s4 + $0x20] sm:$0xff] (!%p295_p9)  ;;  %v372_v7 = vld [vmem:[%s3279_s4 + $0x28] sm:$0xff] (!%p295_p9)  ;;  %vm1199_vm1 = vcmask (!%p295_p9), 1043456   ;;  %vm1143_vm2 = vcmask (!%p295_p9), 31744  }
  0x11   : > { %v2169_v5 = vpack.c.bf16 (!%p295_p9), %v370_v4, %v369_v2  ;;  %v2173_v8 = vpack.c.bf16 (!%p295_p9), %v372_v7, %v371_v6  ;;  %v373_v9 = vld [vmem:[%s3279_s4 + $0x30] sm:$0xff] (!%p295_p9)  ;;  %v374_v10 = vld [vmem:[%s3279_s4 + $0x38] sm:$0xff] (!%p295_p9)  ;;  %v375_v13 = vld [vmem:[%s3279_s4 + $0x40] sm:$0xff] (!%p295_p9)  ;;  %vm1388_vm3 = vcmask (!%p295_p9), 1040384   ;;  %s334_s10 = sand.u32 (!%p295_p9), 1, %s2538_s28  }
  0x12   : > { %2166 = vmatprep.subr.bf16.mxu1 (!%p295_p9), %v2165_v3  ;;  %v2177_v12 = vpack.c.bf16 (!%p295_p9), %v374_v10, %v373_v9  ;;  %v376_v14 = vld [vmem:[%s3279_s4 + $0x48] sm:$0xff] (!%p295_p9)  ;;  %v557_v15 = vld [vmem:[%s3279_s4 + $0x100] sm:$0xff] (!%p295_p9)  ;;  %v559_v17 = vld [vmem:[%s3279_s4 + $0x110] sm:$0xff] (!%p295_p9)  ;;  %s335_s21 = scalar_lea.vmem (!%p295_p9), [#allocation2], %s334_s10 }
  0x13   : > { %2168 = vmatpush3.bf16.msra.mxu1 (!%p295_p9), %v2165_v3  ;;  %v558_v16 = vld [vmem:[%s3279_s4 + $0x108] sm:$0xff] (!%p295_p9)  ;;  %v2181_v18 = vpack.c.bf16 (!%p295_p9), %v376_v14, %v375_v13  ;;  %v377_v19 = vld [vmem:[%s3279_s4 + $0x50] sm:$0xff] (!%p295_p9)  ;;  %v560_v21 = vld [vmem:[%s3279_s4 + $0x118] sm:$0xff] (!%p295_p9) }
  0x14   : > { %2170 = vmatprep.subr.bf16.mxu1 (!%p295_p9), %v2169_v5  ;;  %v2229_v20 = vpack.c.bf16 (!%p295_p9), %v558_v16, %v557_v15  ;;  %v378_v22 = vld [vmem:[%s3279_s4 + $0x58] sm:$0xff] (!%p295_p9)  ;;  %v2233_v23 = vpack.c.bf16 (!%p295_p9), %v560_v21, %v559_v17  ;;  %v561_v24 = vld [vmem:[%s3279_s4 + $0x120] sm:$0xff] (!%p295_p9)  ;;  %v562_v25 = vld [vmem:[%s3279_s4 + $0x128] sm:$0xff] (!%p295_p9) }
  0x15   : > { %v2185_v26 = vpack.c.bf16 (!%p295_p9), %v378_v22, %v377_v19  ;;  %v379_v27 = vld [vmem:[%s3279_s4 + $0x60] sm:$0xff] (!%p295_p9)  ;;  %v2237_v28 = vpack.c.bf16 (!%p295_p9), %v562_v25, %v561_v24  ;;  %v380_v29 = vld [vmem:[%s3279_s4 + $0x68] sm:$0xff] (!%p295_p9)  ;;  %v563_v30 = vld [vmem:[%s3279_s4 + $0x130] sm:$0xff] (!%p295_p9) }
  0x16   : > { %2230 = vmatprep.subr.bf16.mxu0 (!%p295_p9), %v2229_v20  ;;  %v564_v31 = vld [vmem:[%s3279_s4 + $0x138] sm:$0xff] (!%p295_p9)  ;;  %v2189_v32 = vpack.c.bf16 (!%p295_p9), %v380_v29, %v379_v27  ;;  %v381_v33 = vld [vmem:[%s3279_s4 + $0x70] sm:$0xff] (!%p295_p9)  ;;  %v565_v36 = vld [vmem:[%s3279_s4 + $0x140] sm:$0xff] (!%p295_p9) }
  0x17   : > { %s2666_s13 = scalar_select %p341_p10, %s2619_s9, 7  ;;  %2172 = vmatpush3.bf16.msra.mxu1 %v2169_v5  ;;  %2232 = vmatpush3.bf16.msra.mxu0 %v2229_v20  ;;  %v2241_v34 = vpack.c.bf16 %v564_v31, %v563_v30  ;;  %v382_v35 = vld [vmem:[%s3279_s4 + $0x78] sm:$0xff]  ;;  %v566_v37 = vld [vmem:[%s3279_s4 + $0x148] sm:$0xff]  ;;  %v462_v39 = vld [vmem:[%s3279_s4 + $0x80] sm:$0xff] }
  0x18   : > { %2174 = vmatprep.subr.bf16.mxu1 %v2173_v8  ;;  %2234 = vmatprep.subr.bf16.mxu0 %v2233_v23  ;;  %v2193_v38 = vpack.c.bf16 %v382_v35, %v381_v33  ;;  %v2245_v40 = vpack.c.bf16 %v566_v37, %v565_v36  ;;  %v463_v41 = vld [vmem:[%s3279_s4 + $0x88] sm:$0xff]  ;;  %v567_v42 = vld [vmem:[%s3279_s4 + $0x150] sm:$0xff]  ;;  %v568_v43 = vld [vmem:[%s3279_s4 + $0x158] sm:$0xff]  ;;  %v2548_v36 = vmov 0.0|0.0  }
  0x19   : > { %s1653_s17 = sshll.u32 %s2666_s13, 4  ;;  %v2197_v44 = vpack.c.bf16 %v463_v41, %v462_v39  ;;  %v2249_v45 = vpack.c.bf16 %v568_v43, %v567_v42  ;;  %v464_v46 = vld [vmem:[%s3279_s4 + $0x90] sm:$0xff]  ;;  %v465_v47 = vld [vmem:[%s3279_s4 + $0x98] sm:$0xff]  ;;  %v569_v48 = vld [vmem:[%s3279_s4 + $0x160] sm:$0xff]  ;;  %s359_s26 = scalar_lea.vmem %s3283_s8, %s2666_s13 }
  0x1a   : > { %s2674_s20 = scalar_lea.vmem %s3287_s2, %s1653_s17  ;;  %s2760_s25 = scalar_lea.vmem %s3278_s3, %s1653_s17  ;;  %v570_v49 = vld [vmem:[%s3279_s4 + $0x168] sm:$0xff]  ;;  %v2201_v51 = vpack.c.bf16 %v465_v47, %v464_v46  ;;  %v466_v53 = vld [vmem:[%s3279_s4 + $0xa0] sm:$0xff]  ;;  %v468_v57 = vld [vmem:[%s3279_s4 + $0xb0] sm:$0xff] }
  0x1b   : > { %v363_v11 = vld [vmem:[%s2674_s20] sm:$0xff]  ;;  %2176 = vmatpush3.bf16.msra.mxu1 %v2173_v8  ;;  %2236 = vmatpush3.bf16.msra.mxu0 %v2233_v23  ;;  %v364_v50 = vld [vmem:[%s2674_s20 + $0x8] sm:$0xff]  ;;  %v2253_v55 = vpack.c.bf16 %v570_v49, %v569_v48  ;;  %v469_v58 = vld [vmem:[%s3279_s4 + $0xb8] sm:$0xff]  ;;  %s343_s17 = scalar_lea.vmem %s3275_s0, %s2666_s13  ;;  %s356_s19 = scalar_lea.vmem %s3281_s6, %s2666_s13 }
  0x1c   : > { %1860 = vmatprep.mubr.f32.mxu1 %v363_v11  ;;  %2178 = vmatprep.subr.bf16.mxu1 %v2177_v12  ;;  %v365_v52 = vld [vmem:[%s2760_s25] sm:$0xff]  ;;  %v467_v54 = vld [vmem:[%s3279_s4 + $0xa8] sm:$0xff]  ;;  %v2209_v59 = vpack.c.bf16 %v469_v58, %v468_v57  ;;  %v472_v63 = vld [vmem:[%s3279_s4 + $0xd0] sm:$0xff]  ;;  %s1530_s2 = sshll.u32 %s335_s21, 4  ;;  %s3235_s2 = int_to_ptr.vmem [resolvable:$true] %s1530_s2 }
  0x1d   : > { %2238 = vmatprep.subr.bf16.mxu0 %v2237_v28  ;;  %v2205_v56 = vpack.c.bf16 %v467_v54, %v466_v53  ;;  %v470_v60 = vld [vmem:[%s3279_s4 + $0xc0] sm:$0xff]  ;;  %v471_v61 = vld [vmem:[%s3279_s4 + $0xc8] sm:$0xff]  ;;  %v473_v0 = vld [vmem:[%s3279_s4 + $0xd8] sm:$0xff]  ;;  %s2484_s13 = scalar_lea.vmem %s3235_s2, 16 }
  0x1e   : > { %v2213_v62 = vpack.c.bf16 %v471_v61, %v470_v60  ;;  %v2217_v1 = vpack.c.bf16 %v473_v0, %v472_v63  ;;  %v474_v2 = vld [vmem:[%s3279_s4 + $0xe0] sm:$0xff]  ;;  %v475_v3 = vld [vmem:[%s3279_s4 + $0xe8] sm:$0xff]  ;;  %v476_v5 = vld [vmem:[%s3279_s4 + $0xf0] sm:$0xff]  ;;  %p2485_p11 = scmp.ne.s32.totalorder %s3235_s2, %s2484_s13 }
  0x1f   : > { %2180 = vmatpush3.bf16.msra.mxu1 %v2177_v12  ;;  %2240 = vmatpush3.bf16.msra.mxu0 %v2237_v28  ;;  %v2221_v4 = vpack.c.bf16 %v475_v3, %v474_v2  ;;  %v477_v6 = vld [vmem:[%s3279_s4 + $0xf8] sm:$0xff]  ;;  %v366_v8 = vld [vmem:[%s2760_s25 + $0x8] sm:$0xff]  ;;  %v571_v9 = vld [vmem:[%s3279_s4 + $0x170] sm:$0xff]  ;;  %s1515_s25 = scalar_lea.sflag [#allocation3], %s334_s10 }
  0x20   : > { %2182 = vmatprep.subr.bf16.mxu1 %v2181_v18  ;;  %2242 = vmatprep.subr.bf16.mxu0 %v2241_v34  ;;  %v2225_v7 = vpack.c.bf16 %v477_v6, %v476_v5  ;;  %v572_v10 = vld [vmem:[%s3279_s4 + $0x178] sm:$0xff]  ;;  %v652_v12 = vld [vmem:[%s3279_s4 + $0x180] sm:$0xff]  ;;  %v653_v13 = vld [vmem:[%s3279_s4 + $0x188] sm:$0xff]  ;;  %p2486_p12 = pnand %p2485_p11, %p2636_p5 }
  0x21   : > { %v2257_v11 = vpack.c.bf16 %v572_v10, %v571_v9  ;;  %v2261_v14 = vpack.c.bf16 %v653_v13, %v652_v12  ;;  %v654_v15 = vld [vmem:[%s3279_s4 + $0x190] sm:$0xff]  ;;  %v655_v16 = vld [vmem:[%s3279_s4 + $0x198] sm:$0xff]  ;;  %v656_v17 = vld [vmem:[%s3279_s4 + $0x1a0] sm:$0xff] }
  0x22   : > { %v657_v19 = vld [vmem:[%s3279_s4 + $0x1a8] sm:$0xff]  ;;  %v658_v21 = vld [vmem:[%s3279_s4 + $0x1b0] sm:$0xff]  ;;  %v659_v22 = vld [vmem:[%s3279_s4 + $0x1b8] sm:$0xff]  ;;  %p2487_p13 = pneg %p2486_p12 }
  0x23   : > { %2184 = vmatpush3.bf16.msra.mxu1 %v2181_v18  ;;  %2244 = vmatpush3.bf16.msra.mxu0 %v2241_v34  ;;  %v2265_v18 = vpack.c.bf16 %v655_v16, %v654_v15  ;;  %v2269_v20 = vpack.c.bf16 %v657_v19, %v656_v17  ;;  %v2273_v23 = vpack.c.bf16 %v659_v22, %v658_v21  ;;  %v660_v24 = vld [vmem:[%s3279_s4 + $0x1c0] sm:$0xff]  ;;  %v661_v25 = vld [vmem:[%s3279_s4 + $0x1c8] sm:$0xff]  ;;  %v662_v27 = vld [vmem:[%s3279_s4 + $0x1d0] sm:$0xff] }
  0x24   : > { %2186 = vmatprep.subr.bf16.mxu1 %v2185_v26  ;;  %2246 = vmatprep.subr.bf16.mxu0 %v2245_v40  ;;  %v663_v28 = vld [vmem:[%s3279_s4 + $0x1d8] sm:$0xff]  ;;  %v664_v30 = vld [vmem:[%s3279_s4 + $0x1e0] sm:$0xff]  ;;  %v665_v31 = vld [vmem:[%s3279_s4 + $0x1e8] sm:$0xff] }
  0x25   : > { %v2281_v29 = vpack.c.bf16 %v663_v28, %v662_v27  ;;  %v666_v33 = vld [vmem:[%s3279_s4 + $0x1f0] sm:$0xff]  ;;  %v667_v34 = vld [vmem:[%s3279_s4 + $0x1f8] sm:$0xff]  ;;  %v837_v37 = vld [vmem:[%s3279_s4 + $0x280] sm:$0xff] }
  0x26   : > { %v2289_v35 = vpack.c.bf16 %v667_v34, %v666_v33  ;;  %v2877_v43 = vld [vmem:[%s3280_s5] sm:$0xff]  ;;  %v748_v46 = vld [vmem:[%s3279_s4 + $0x208] sm:$0xff]  ;;  %v750_v53 = vld [vmem:[%s3279_s4 + $0x218] sm:$0xff] }
  0x27   : > { %2188 = vmatpush3.bf16.msra.mxu1 %v2185_v26  ;;  %2248 = vmatpush3.bf16.msra.mxu0 %v2245_v40  ;;  %v2277_v26 = vpack.c.bf16 %v661_v25, %v660_v24  ;;  %v383_v40 = vlaneseq  ;;  %v752_v57 = vld [vmem:[%s3279_s4 + $0x228] sm:$0xff]  ;;  %v754_v60 = vld [vmem:[%s3279_s4 + $0x238] sm:$0xff]  ;;  %v942_v10 = vld [vmem:[%s3279_s4 + $0x300] sm:$0xff] }
  0x28   : > { %2190 = vmatprep.subr.bf16.mxu1 %v2189_v32  ;;  %2250 = vmatprep.subr.bf16.mxu0 %v2249_v45  ;;  %v756_v63 = vld [vmem:[%s3279_s4 + $0x248] sm:$0xff]  ;;  %v758_v2 = vld [vmem:[%s3279_s4 + $0x258] sm:$0xff]  ;;  %v839_v16 = vld [vmem:[%s3279_s4 + $0x290] sm:$0xff] }
  0x29   : > { %v2871_v41 = vshrl.u32 %v383_v40, 7  ;;  %v760_v5 = vld [vmem:[%s3279_s4 + $0x268] sm:$0xff]  ;;  %v762_v9 = vld [vmem:[%s3279_s4 + $0x278] sm:$0xff]  ;;  %v944_v19 = vld [vmem:[%s3279_s4 + $0x310] sm:$0xff] }
  0x2a   : > { %v840_v17 = vld [vmem:[%s3279_s4 + $0x298] sm:$0xff]  ;;  %v2971_v22 = vld [vmem:[%s343_s17] sm:$0x1]  ;;  %v948_v34 = vld [vmem:[%s3279_s4 + $0x330] sm:$0xff]  ;;  %s1650_s17 = sshll.u32 %s2619_s9, 4  ;;  %s2552_s9 = smov [#allocation2]  }
  0x2b   : > { %2192 = vmatpush3.bf16.msra.mxu1 %v2189_v32  ;;  %2252 = vmatpush3.bf16.msra.mxu0 %v2249_v45  ;;  %v2285_v32 = vpack.c.bf16 %v665_v31, %v664_v30  ;;  %v385_v42 = vsub.s32 0, %v2871_v41  ;;  %v747_v45 = vld [vmem:[%s3279_s4 + $0x200] sm:$0xff]  ;;  %v480_v6 = vsub.s32 1, %v2871_v41  ;;  %v2321_v24 = vpack.c.bf16 %v840_v17, %v839_v16  ;;  %v843_v31 = vld [vmem:[%s3279_s4 + $0x2b0] sm:$0xff]  ;;  %s3233_s23 = scalar_lea.hbm %s3282_s7, %s1650_s17  ;;  %s2488_s24 = sshll.u32 %s2552_s9, 4  ;;  %s2489_s24 = int_to_ptr.vmem [resolvable:$false] %s2488_s24 }
  0x2c   : > { %2194 = vmatprep.subr.bf16.mxu1 %v2193_v38  ;;  %2254 = vmatprep.subr.bf16.mxu0 %v2253_v55  ;;  %v841_v25 = vld [vmem:[%s3279_s4 + $0x2a0] sm:$0xff]  ;;  %p2491_p0 = scmp.lt.s32.totalorder %s3235_s2, %s2489_s24 }
  0x2d   : > { %v481_v12 = vrot.slane %v2877_v43, %v480_v6  ;;  %v946_v28 = vld [vmem:[%s3279_s4 + $0x320] sm:$0xff] }
  0x2f   : > { %2196 = vmatpush3.bf16.msra.mxu1 %v2193_v38  ;;  %2256 = vmatpush3.bf16.msra.mxu0 %v2253_v55  ;;  %v838_v38 = vld [vmem:[%s3279_s4 + $0x288] sm:$0xff]  ;;  %v2550_v55 = vmov 0.0  }
  0x30   : > { %2198 = vmatprep.subr.bf16.mxu1 %v2197_v44  ;;  %2258 = vmatprep.subr.bf16.mxu0 %v2257_v11  ;;  %v2868_v39 = vpack.c.bf16 %v838_v38, %v837_v37  ;;  %v845_v38 = vld [vmem:[%s3279_s4 + $0x2c0] sm:$0xff] }
  0x32   : > { %1861 = vmatmul.mubr.f32.vlgmr.msra.gmra.mrb[0].mxu1 %v364_v50 }
  0x33   : > { %2200 = vmatpush3.bf16.msra.mxu1 %v2197_v44  ;;  %1895 = vmatprep.mubr.f32.mxu1 %v365_v52  ;;  %v386_v44 = vrot.slane %v2877_v43, %v385_v42  ;;  %v749_v52 = vld [vmem:[%s3279_s4 + $0x210] sm:$0xff] }
  0x34   : > { %2202 = vmatprep.subr.bf16.mxu1 %v2201_v51  ;;  %2260 = vmatpush3.bf16.msra.mxu0 %v2257_v11  ;;  %v2297_v54 = vpack.c.bf16 %v750_v53, %v749_v52  ;;  %v943_v11 = vld [vmem:[%s3279_s4 + $0x308] sm:$0xff]  ;;  %v953_v52 = vld [vmem:[%s3279_s4 + $0x358] sm:$0xff] }
  0x35   : > { %2293 = vmatprep.subr.bf16.mxu0 %v2548_v36 }
  0x37   : > { %2204 = vmatpush3.bf16.msra.mxu1 %v2201_v51  ;;  %v2294_v51 = vpack.c.bf16 %v748_v46, %v747_v45  ;;  %v951_v45 = vld [vmem:[%s3279_s4 + $0x348] sm:$0xff] }
  0x38   : > { %2206 = vmatprep.subr.bf16.mxu1 %v2205_v56 }
  0x3b   : > { %2208 = vmatpush3.bf16.msra.mxu1 %v2205_v56  ;;  %v751_v56 = vld [vmem:[%s3279_s4 + $0x220] sm:$0xff] }
  0x3c   : > { %2210 = vmatprep.subr.bf16.mxu1 %v2209_v59  ;;  %v2300_v58 = vpack.c.bf16 %v752_v57, %v751_v56  ;;  %v850_v56 = vld [vmem:[%s3279_s4 + $0x2e8] sm:$0xff] }
  0x3f   : > { %2212 = vmatpush3.bf16.msra.mxu1 %v2209_v59  ;;  %v753_v59 = vld [vmem:[%s3279_s4 + $0x230] sm:$0xff] }
  0x40   : > { %2214 = vmatprep.subr.bf16.mxu1 %v2213_v62  ;;  %v2303_v61 = vpack.c.bf16 %v754_v60, %v753_v59  ;;  %v955_v59 = vld [vmem:[%s3279_s4 + $0x368] sm:$0xff] }
  0x43   : > { %2216 = vmatpush3.bf16.msra.mxu1 %v2213_v62  ;;  %v755_v62 = vld [vmem:[%s3279_s4 + $0x240] sm:$0xff] }
  0x44   : > { %2218 = vmatprep.subr.bf16.mxu1 %v2217_v1  ;;  %v2306_v0 = vpack.c.bf16 %v756_v63, %v755_v62  ;;  %v852_v62 = vld [vmem:[%s3279_s4 + $0x2f8] sm:$0xff] }
  0x47   : > { %2220 = vmatpush3.bf16.msra.mxu1 %v2217_v1  ;;  %v757_v1 = vld [vmem:[%s3279_s4 + $0x250] sm:$0xff] }
  0x48   : > { %2222 = vmatprep.subr.bf16.mxu1 %v2221_v4  ;;  %v2309_v3 = vpack.c.bf16 %v758_v2, %v757_v1  ;;  %v956_v1 = vld [vmem:[%s3279_s4 + $0x370] sm:$0xff]  ;;  %v957_v2 = vld [vmem:[%s3279_s4 + $0x378] sm:$0xff] }
  0x4b   : > { %2224 = vmatpush3.bf16.msra.mxu1 %v2221_v4  ;;  %v759_v4 = vld [vmem:[%s3279_s4 + $0x260] sm:$0xff] }
  0x4c   : > { %2226 = vmatprep.subr.bf16.mxu1 %v2225_v7 }
  0x4f   : > { %2228 = vmatpush3.bf16.msra.mxu1 %v2225_v7  ;;  %v2312_v7 = vpack.c.bf16 %v760_v5, %v759_v4  ;;  %v3058_v4 = vld [vmem:[%s3280_s5 + $0x8] sm:$0x7f]  ;;  %v575_v5 = vsub.s32 2, %v2871_v41 }
  0x50   : > { %2262 = vmatprep.subr.bf16.mxu1 %v2261_v14 }
  0x51   : > { %v576_v6 = vrot.slane %v2877_v43, %v575_v5 }
  0x52   : > { %1896 = vmatmul.mubr.f32.vlgmr.msra.gmra.mrb[2].mxu1 %v366_v8  ;;  %v761_v8 = vld [vmem:[%s3279_s4 + $0x270] sm:$0xff] }
  0x53   : > { %2264 = vmatpush3.bf16.msra.mxu1 %v2261_v14  ;;  %v2315_v13 = vpack.c.bf16 %v762_v9, %v761_v8  ;;  %v2349_v14 = vpack.c.bf16 %v943_v11, %v942_v10  ;;  %v670_v11 = vsub.s32 3, %v2871_v41 }
  0x54   : > { %2266 = vmatprep.subr.bf16.mxu1 %v2265_v18 }
  0x57   : > { %2268 = vmatpush3.bf16.msra.mxu1 %v2265_v18 }
  0x58   : > { %2270 = vmatprep.subr.bf16.mxu1 %v2269_v20 }
  0x5b   : > { %2272 = vmatpush3.bf16.msra.mxu1 %v2269_v20  ;;  %v945_v20 = vld [vmem:[%s3279_s4 + $0x318] sm:$0xff] }
  0x5c   : > { %2274 = vmatprep.subr.bf16.mxu1 %v2273_v23  ;;  %v2353_v27 = vpack.c.bf16 %v945_v20, %v944_v19  ;;  %v764_v19 = vrot.slane %v2877_v43, 4 }
  0x5f   : > { %2276 = vmatpush3.bf16.msra.mxu1 %v2273_v23 }
  0x60   : > { %2278 = vmatprep.subr.bf16.mxu1 %v2277_v26 }
  0x63   : > { %2280 = vmatpush3.bf16.msra.mxu1 %v2277_v26  ;;  %v842_v26 = vld [vmem:[%s3279_s4 + $0x2a8] sm:$0xff] }
  0x64   : > { %2282 = vmatprep.subr.bf16.mxu1 %v2281_v29  ;;  %v2325_v30 = vpack.c.bf16 %v842_v26, %v841_v25 }
  0x67   : > { %2284 = vmatpush3.bf16.msra.mxu1 %v2281_v29  ;;  %v947_v29 = vld [vmem:[%s3279_s4 + $0x328] sm:$0xff] }
  0x68   : > { %2286 = vmatprep.subr.bf16.mxu1 %v2285_v32  ;;  %v2357_v33 = vpack.c.bf16 %v947_v29, %v946_v28 }
  0x6b   : > { %2288 = vmatpush3.bf16.msra.mxu1 %v2285_v32  ;;  %v844_v32 = vld [vmem:[%s3279_s4 + $0x2b8] sm:$0xff] }
  0x6c   : > { %2290 = vmatprep.subr.bf16.mxu1 %v2289_v35  ;;  %v2329_v37 = vpack.c.bf16 %v844_v32, %v843_v31 }
  0x6f   : > { %2292 = vmatpush3.bf16.msra.mxu1 %v2289_v35  ;;  %v949_v35 = vld [vmem:[%s3279_s4 + $0x338] sm:$0xff] }
  0x70   : > { %2318 = vmatprep.subr.bf16.mxu1 %v2868_v39  ;;  %v2361_v40 = vpack.c.bf16 %v949_v35, %v948_v34 }
 0x105   : > { %v1862_v47 = vpop.f32.mrb[0].mxu1 }
 0x106   : > { %v2888_v48 = vadd.f32 %v1862_v47, %v386_v44  ;;  %v453_v49 = vpop.f32.mrb[1].mxu1  ;;  %v847_v47 = vld [vmem:[%s3279_s4 + $0x2d0] sm:$0xff] }
 0x107   : > { %v2890_v50 = vadd.f32 %v453_v49, %v386_v44  ;;  %v950_v44 = vld [vmem:[%s3279_s4 + $0x340] sm:$0xff]  ;;  %v848_v49 = vld [vmem:[%s3279_s4 + $0x2d8] sm:$0xff] }
 0x108   : > { %v2337_v53 = vpack.c.bf16 %v848_v49, %v847_v47 }
 0x109   : > { %1930 = vmatprep.mubr.f32.mxu0 %v2890_v50 }
 0x10a   : > { %1931 = vmatmul.mubr.f32.vlgmr.msra.gmra.mrb[0].mxu0 %v2888_v48 }
 0x10b   : > { %2295 = vmatpush3.bf16.msra.mxu0 %v2294_v51  ;;  %2000 = vmatprep.mubr.msk.f32.mxu0 %vm2549_vm0, %v2550_v55  ;;  %v952_v51 = vld [vmem:[%s3279_s4 + $0x350] sm:$0xff] }
 0x10c   : > { %2296 = vmatprep.subr.bf16.mxu0 %v2548_v36  ;;  %v2369_v57 = vpack.c.bf16 %v953_v52, %v952_v51 }
 0x10f   : > { %2298 = vmatpush3.bf16.msra.mxu0 %v2297_v54  ;;  %v849_v54 = vld [vmem:[%s3279_s4 + $0x2e0] sm:$0xff] }
 0x110   : > { %2299 = vmatprep.subr.bf16.mxu0 %v2548_v36  ;;  %v2341_v60 = vpack.c.bf16 %v850_v56, %v849_v54 }
 0x113   : > { %2301 = vmatpush3.bf16.msra.mxu0 %v2300_v58  ;;  %v954_v58 = vld [vmem:[%s3279_s4 + $0x360] sm:$0xff] }
 0x114   : > { %2302 = vmatprep.subr.bf16.mxu0 %v2548_v36  ;;  %v2373_v63 = vpack.c.bf16 %v955_v59, %v954_v58 }
 0x117   : > { %2304 = vmatpush3.bf16.msra.mxu0 %v2303_v61  ;;  %v851_v61 = vld [vmem:[%s3279_s4 + $0x2f0] sm:$0xff] }
 0x118   : > { %2305 = vmatprep.subr.bf16.mxu0 %v2548_v36 }
 0x11b   : > { %2307 = vmatpush3.bf16.msra.mxu0 %v2306_v0  ;;  %v2345_v0 = vpack.c.bf16 %v852_v62, %v851_v61 }
 0x11c   : > { %2308 = vmatprep.subr.bf16.mxu0 %v2548_v36 }
 0x11f   : > { %2310 = vmatpush3.bf16.msra.mxu0 %v2309_v3  ;;  %v2377_v3 = vpack.c.bf16 %v957_v2, %v956_v1 }
 0x120   : > { %2311 = vmatprep.subr.bf16.mxu0 %v2548_v36 }
 0x123   : > { %2313 = vmatpush3.bf16.msra.mxu0 %v2312_v7 }
 0x124   : > { %2314 = vmatprep.subr.bf16.mxu0 %v2548_v36 }
 0x125   : > { %v1897_v15 = vpop.f32.mrb[2].mxu1 }
 0x126   : > { %v548_v18 = vpop.f32.mrb[3].mxu1  ;;  %v2973_v23 = vadd.f32 %v1897_v15, %v481_v12 }
 0x127   : > { %v2969_v21 = vadd.f32 %v548_v18, %v481_v12  ;;  %2316 = vmatpush3.bf16.msra.mxu0 %v2315_v13  ;;  %v671_v12 = vrot.slane %v2877_v43, %v670_v11 }
 0x128   : > { %2350 = vmatprep.subr.bf16.mxu0 %v2349_v14 }
 0x129   : > { %1965 = vmatprep.mubr.f32.mxu1 %v2969_v21 }
 0x12a   : > { %1966 = vmatmul.mubr.f32.vlgmr.msra.gmra.mrb[4].mxu1 %v2973_v23  ;;  %2001 = vmatmul.mubr.f32.vlgmr.msra.gmra.mrb[2].mxu0 %v2971_v22 }
 0x12b   : > { %2320 = vmatpush3.bf16.msra.mxu1 %v2868_v39  ;;  %2035 = vmatprep.mubr.f32.mxu1 %v2890_v50  ;;  %v846_v39 = vld [vmem:[%s3279_s4 + $0x2c8] sm:$0xff]  ;;  %v2365_v50 = vpack.c.bf16 %v951_v45, %v950_v44 }
 0x12c   : > { %2322 = vmatprep.subr.bf16.mxu1 %v2321_v24  ;;  %2352 = vmatpush3.bf16.msra.mxu0 %v2349_v14  ;;  %v2333_v46 = vpack.c.bf16 %v846_v39, %v845_v38 }
 0x12d   : > { %2354 = vmatprep.subr.bf16.mxu0 %v2353_v27 }
 0x12f   : > { %2324 = vmatpush3.bf16.msra.mxu1 %v2321_v24 }
 0x130   : > { %2326 = vmatprep.subr.bf16.mxu1 %v2325_v30  ;;  %2356 = vmatpush3.bf16.msra.mxu0 %v2353_v27 }
 0x131   : > { %2358 = vmatprep.subr.bf16.mxu0 %v2357_v33 }
 0x133   : > { %2328 = vmatpush3.bf16.msra.mxu1 %v2325_v30 }
 0x134   : > { %2330 = vmatprep.subr.bf16.mxu1 %v2329_v37  ;;  %2360 = vmatpush3.bf16.msra.mxu0 %v2357_v33 }
 0x135   : > { %2362 = vmatprep.subr.bf16.mxu0 %v2361_v40 }
 0x137   : > { %2332 = vmatpush3.bf16.msra.mxu1 %v2329_v37 }
 0x138   : > { %2334 = vmatprep.subr.bf16.mxu1 %v2333_v46  ;;  %2364 = vmatpush3.bf16.msra.mxu0 %v2361_v40 }
 0x139   : > { %2366 = vmatprep.subr.bf16.mxu0 %v2365_v50 }
 0x13b   : > { %2336 = vmatpush3.bf16.msra.mxu1 %v2333_v46 }
 0x13c   : > { %2338 = vmatprep.subr.bf16.mxu1 %v2337_v53  ;;  %2368 = vmatpush3.bf16.msra.mxu0 %v2365_v50 }
 0x13d   : > { %2370 = vmatprep.subr.bf16.mxu0 %v2369_v57 }
 0x13f   : > { %2340 = vmatpush3.bf16.msra.mxu1 %v2337_v53 }
 0x140   : > { %2342 = vmatprep.subr.bf16.mxu1 %v2341_v60  ;;  %2372 = vmatpush3.bf16.msra.mxu0 %v2369_v57 }
 0x141   : > { %2374 = vmatprep.subr.bf16.mxu0 %v2373_v63 }
 0x143   : > { %2344 = vmatpush3.bf16.msra.mxu1 %v2341_v60 }
 0x144   : > { %2346 = vmatprep.subr.bf16.mxu1 %v2345_v0  ;;  %2376 = vmatpush3.bf16.msra.mxu0 %v2373_v63 }
 0x145   : > { %2378 = vmatprep.subr.bf16.mxu0 %v2377_v3 }
 0x147   : > { %2348 = vmatpush3.bf16.msra.mxu1 %v2345_v0 }
 0x148   : > { %2380 = vmatpush3.bf16.msra.mxu0 %v2377_v3 }
 0x14a   : > { %2036 = vmatmul.mubr.f32.vlgmr.msra.gmra.mrb[6].mxu1 %v2888_v48  ;;  %v1056_v48 = vrot.slane %v3058_v4, 3 }
 0x14b   : > { %2038 = vmatprep.mubr.f32.mxu1 %v2969_v21  ;;  %v855_v21 = vsub.s32 5, %v2871_v41 }
 0x14c   : > { %2079 = vmatprep.subr.mxu0 %v1056_v48  ;;  %2087 = vmatprep.subr.msk.mxu1 %vm1199_vm1, %v1056_v48 }
 0x14d   : > { %v856_v24 = vrot.slane %v2877_v43, %v855_v21  ;;  %2088 = vmatpush3.msk.msra.mxu1 %vm1199_vm1, %v1056_v48 }
 0x14e   : > { %2039 = vmatmul.mubr.f32.gmra.mrb[8].mxu1 %v2973_v23  ;;  %2381 = vmatprep.subr.bf16.mxu1 %v2548_v36 }
 0x1dd   : > { %v1932_v7 = vpop.f32.mrb[0].mxu0 }
 0x1de   : > { %v643_v8 = vpop.f32.mrb[1].mxu0  ;;  %v649_v10 = vadd.f32 %v1932_v7, %v576_v6 }
 0x1df   : > { %v644_v9 = vadd.f32 %v643_v8, %v576_v6 }
 0x1e1   : > { %2073 = vmatprep.mubr.f32.mxu0 %v644_v9 }
 0x1e2   : > { %2074 = vmatmul.mubr.f32.vlgmr.msra.gmra.mrb[4].mxu0 %v649_v10 }
 0x1e3   : > { %2080 = vmatpush3.xpose.msra.mxu0 %v1056_v48 }
 0x1e4   : > { %2405 = vmatprep.subr.bf16.mxu0 %v2548_v36 }
 0x1fd   : > { %v1967_v13 = vpop.f32.mrb[4].mxu1  ;;  %v832_v14 = vpop.f32.mrb[2].mxu0 }
 0x1fe   : > { %v738_v15 = vpop.f32.mrb[5].mxu1  ;;  %v2002_v16 = vpop.f32.mrb[3].mxu0  ;;  %v744_v18 = vadd.f32 %v1967_v13, %v671_v12  ;;  %v833_v20 = vadd.f32 %v832_v14, %v764_v19 }
 0x1ff   : > { %v739_v17 = vadd.f32 %v738_v15, %v671_v12 }
 0x200   : > { %v836_v23 = vmul.f32 0.17677669, %v833_v20 }
 0x201   : > { %2076 = vmatprep.mubr.f32.mxu0 %v739_v17 }
 0x202   : > { %2077 = vmatmul.mubr.f32.gmra.mrb[6].mxu0 %v744_v18  ;;  %v1050_v25 = vrot.slane %v836_v23, %v385_v42 }
 0x21d   : > { %v2037_v26 = vpop.f32.mrb[6].mxu1 }
 0x21e   : > { %v929_v27 = vadd.f32 %v2037_v26, %v856_v24  ;;  %v923_v28 = vpop.f32.mrb[7].mxu1  ;;  %v1300_v26 = vld [vmem:[%s3279_s4 + $0x380] sm:$0xff] }
 0x21f   : > { %v924_v29 = vadd.f32 %v923_v28, %v856_v24 }
 0x220   : > { %v1052_v30 = vmul.f32 %v1050_v25, %v929_v27  ;;  %v1301_v27 = vld [vmem:[%s3279_s4 + $0x388] sm:$0xff] }
 0x221   : > { %v1051_v31 = vmul.f32 %v1050_v25, %v924_v29  ;;  %v2040_v32 = vpop.f32.mrb[8].mxu1  ;;  %v2382_v29 = vpack.c.bf16 %v1301_v27, %v1300_v26  ;;  %v1429_v27 = vld [vmem:[%s3276_s1 + $0x18] sm:$0xff] }
 0x222   : > { %v939_v33 = vadd.f32 %v2040_v32, %v856_v24  ;;  %v933_v34 = vpop.f32.mrb[9].mxu1 }
 0x223   : > { %v934_v35 = vadd.f32 %v933_v34, %v856_v24  ;;  %2081 = vmatprep.mubr.f32.mxu0 %v1051_v31  ;;  %v1302_v34 = vld [vmem:[%s3279_s4 + $0x390] sm:$0xff] }
 0x224   : > { %v1054_v37 = vmul.f32 %v1050_v25, %v939_v33  ;;  %2082 = vmatmul.mubr.f32.vlgmr.msra.gmra.mrb[8].mxu0 %v1052_v30 }
 0x225   : > { %v1053_v38 = vmul.f32 %v1050_v25, %v934_v35  ;;  %v1303_v35 = vld [vmem:[%s3279_s4 + $0x398] sm:$0xff] }
 0x227   : > { %2084 = vmatprep.mubr.f32.mxu0 %v1053_v38  ;;  %v1304_v38 = vld [vmem:[%s3279_s4 + $0x3a0] sm:$0xff] }
 0x228   : > { %2085 = vmatmul.mubr.f32.gmra.mrb[10].mxu0 %v1054_v37  ;;  %v2385_v37 = vpack.c.bf16 %v1303_v35, %v1302_v34  ;;  %v1434_v35 = vld [vmem:[%s3276_s1 + $0x40] sm:$0xff] }
 0x229   : > { %2162 = vmatprep.mubr.msk.f32.mxu0 %vm2549_vm0, %v2550_v55 }
 0x2b5   : > { %v3074_v42 = vpop.f32.mrb[4].mxu0 }
 0x2b6   : > { %v3076_v39 = vpop.f32.mrb[5].mxu0 }
 0x2d5   : > { %v3078_v40 = vpop.f32.mrb[6].mxu0 }
 0x2d6   : > { %v3080_v44 = vpop.f32.mrb[7].mxu0 }
 0x2f7   : > { %v2083_v45 = vpop.f32.mrb[8].mxu0 }
 0x2f8   : > { %v1145_v46 = vsel %vm1143_vm2, %v2083_v45, -inf  ;;  %v1124_v47 = vpop.f32.mrb[9].mxu0 }
 0x2f9   : > { %v1144_v49 = vsel %vm1143_vm2, %v1124_v47, -inf }
 0x2fa   : > { %v1148_v50 = vmax.f32 %v1144_v49, %v1145_v46 }
 0x2fb   : > { %v2086_v51 = vpop.f32.mrb[10].mxu0 }
 0x2fc   : > { %v1147_v52 = vsel %vm1143_vm2, %v2086_v51, -inf  ;;  %v1134_v53 = vpop.f32.mrb[11].mxu0 }
 0x2fd   : > { %v1146_v54 = vsel %vm1143_vm2, %v1134_v53, -inf }
 0x2fe   : > { %v1149_v56 = vmax.f32 %v1146_v54, %v1147_v52  ;;  %v1311_v54 = vld [vmem:[%s3279_s4 + $0x3d8] sm:$0xff] }
 0x300   : > { %v1150_v57 = vmax.f32 %v1148_v50, %v1149_v56  ;;  %v1308_v50 = vld [vmem:[%s3279_s4 + $0x3c0] sm:$0xff] }
 0x302   : > { %v1151_v58 = vrot.slane %v1150_v57, 4 }
 0x304   : > { %v1152_v59 = vmax.f32 %v1150_v57, %v1151_v58  ;;  %v1312_v57 = vld [vmem:[%s3279_s4 + $0x3e0] sm:$0xff]  ;;  %v1313_v58 = vld [vmem:[%s3279_s4 + $0x3e8] sm:$0xff] }
 0x306   : > { %v1153_v60 = vrot.slane %v1152_v59, 2 }
 0x308   : > { %v1154_v61 = vmax.f32 %v1152_v59, %v1153_v60  ;;  %v2400_v59 = vpack.c.bf16 %v1313_v58, %v1312_v57  ;;  %v1314_v60 = vld [vmem:[%s3279_s4 + $0x3f0] sm:$0xff]  ;;  %v1441_v58 = vld [vmem:[%s3276_s1 + $0x78] sm:$0xff] }
 0x309   : > { %v1440_v57 = vld [vmem:[%s3276_s1 + $0x70] sm:$0xff] }
 0x30a   : > { %v1155_v62 = vrot.slane %v1154_v61, 1 }
 0x30c   : > { %v1156_v63 = vmax.f32 %v1154_v61, %v1155_v62  ;;  %v1315_v61 = vld [vmem:[%s3279_s4 + $0x3f8] sm:$0xff] }
 0x30d   : > { %v2403_v62 = vpack.c.bf16 %v1315_v61, %v1314_v60  ;;  %v2551_v60 = vmov 1966171168  }
 0x30e   : > { %v1157_v0 = vsub.f32 %v1124_v47, %v1156_v63  ;;  %v1158_v1 = vsub.f32 %v2083_v45, %v1156_v63  ;;  %v1159_v2 = vsub.f32 %v1134_v53, %v1156_v63  ;;  %v1160_v3 = vsub.f32 %v2086_v51, %v1156_v63  ;;  %v1305_v45 = vld [vmem:[%s3279_s4 + $0x3a8] sm:$0xff]  ;;  %v1306_v47 = vld [vmem:[%s3279_s4 + $0x3b0] sm:$0xff] }
 0x30f   : > { %v2388_v46 = vpack.c.bf16 %v1305_v45, %v1304_v38  ;;  %v1309_v51 = vld [vmem:[%s3279_s4 + $0x3c8] sm:$0xff]  ;;  %v1310_v53 = vld [vmem:[%s3279_s4 + $0x3d0] sm:$0xff]  ;;  %v960_v63 = vsub.s32 6, %v2871_v41  ;;  %v1410_v61 = vunpack.c.l.s4 %v2551_v60 }
 0x310   : > { %v1161_v48 = vmul.f32 1.442695, %v1157_v0  ;;  %v1163_v5 = vmul.f32 1.442695, %v1158_v1  ;;  %v1165_v6 = vmul.f32 1.442695, %v1159_v2  ;;  %v2394_v52 = vpack.c.bf16 %v1309_v51, %v1308_v50 }
 0x311   : > { %v1167_v7 = vmul.f32 1.442695, %v1160_v3  ;;  %v2397_v56 = vpack.c.bf16 %v1311_v54, %v1310_v53  ;;  %v961_v0 = vrot.slane %v2877_v43, %v960_v63  ;;  %v1436_v50 = vld [vmem:[%s3276_s1 + $0x50] sm:$0xff]  ;;  %v1437_v51 = vld [vmem:[%s3276_s1 + $0x58] sm:$0xff]  ;;  %v1438_v53 = vld [vmem:[%s3276_s1 + $0x60] sm:$0xff] }
 0x312   : > { %2472 = vpow2.f32 %v1161_v48  ;;  %v1439_v54 = vld [vmem:[%s3276_s1 + $0x68] sm:$0xff] }
 0x313   : > { %2474 = vpow2.f32 %v1163_v5  ;;  %v1034_v1 = vadd.f32 %v3074_v42, %v961_v0  ;;  %v1029_v2 = vadd.f32 %v3076_v39, %v961_v0 }
 0x314   : > { %2476 = vpow2.f32 %v1165_v6 }
 0x315   : > { %2478 = vpow2.f32 %v1167_v7  ;;  %v1044_v7 = vadd.f32 %v3078_v40, %v961_v0 }
 0x31c   : > { %v2473_v8 = vpop.eup %2472 }
 0x31d   : > { %v2475_v9 = vpop.eup %2474  ;;  %v1169_v10 = vsel %vm1143_vm2, %v2473_v8, 0.0 }
 0x31e   : > { %v2477_v11 = vpop.eup %2476  ;;  %v1170_v12 = vsel %vm1143_vm2, %v2475_v9, 0.0 }
 0x31f   : > { %v2479_v13 = vpop.eup %2478  ;;  %v1171_v14 = vadd.f32 %v1170_v12, %v1169_v10  ;;  %v1172_v15 = vsel %vm1143_vm2, %v2477_v11, 0.0 }
 0x320   : > { %v1174_v17 = vsel %vm1143_vm2, %v2479_v13, 0.0 }
 0x321   : > { %v1173_v16 = vadd.f32 %v1172_v15, %v1171_v14 }
 0x323   : > { %v1175_v18 = vadd.f32 %v1174_v17, %v1173_v16 }
 0x325   : > { %v1176_v19 = vrot.slane %v1175_v18, 4 }
 0x327   : > { %v1177_v20 = vadd.f32 %v1176_v19, %v1175_v18 }
 0x329   : > { %v1178_v21 = vrot.slane %v1177_v20, 2 }
 0x32b   : > { %v1179_v23 = vadd.f32 %v1178_v21, %v1177_v20  ;;  %v1316_v20 = vrot.slane %v2877_v43, 7  ;;  %v1428_v43 = vld [vmem:[%s3276_s1 + $0x10] sm:$0xff] }
 0x32d   : > { %v1180_v24 = vrot.slane %v1179_v23, 1 }
 0x32f   : > { %v1181_v25 = vadd.f32 %v1180_v24, %v1179_v23  ;;  %v1426_v24 = vld [vmem:[%s3276_s1] sm:$0xff] }
 0x331   : > { %2480 = vrcp.f32 %v1181_v25  ;;  %v1427_v25 = vld [vmem:[%s3276_s1 + $0x8] sm:$0xff] }
 0x332   : > { %v2406_v26 = vpack.c.bf16 %v1427_v25, %v1426_v24 }
 0x334   : > { %2407 = vmatpush3.bf16.xpose.msra.mxu0 %v2406_v26 }
 0x335   : > { %2408 = vmatprep.subr.bf16.mxu0 %v2548_v36 }
 0x33b   : > { %v2481_v28 = vpop.eup %2480 }
 0x33c   : > { %v1183_v30 = vmul.f32 %v2481_v28, %v2473_v8  ;;  %v1184_v31 = vmul.f32 %v2481_v28, %v2475_v9  ;;  %v1185_v32 = vmul.f32 %v2481_v28, %v2477_v11  ;;  %v1186_v33 = vmul.f32 %v2481_v28, %v2479_v13 }
 0x33d   : > { %v1039_v8 = vadd.f32 %v3080_v44, %v961_v0  ;;  %v2409_v28 = vpack.c.bf16 %v1429_v27, %v1428_v43 }
 0x33e   : > { %2089 = vmatprep.mubr.msk.f32.mxu1 %vm1143_vm2, %v1183_v30  ;;  %v1431_v30 = vld [vmem:[%s3276_s1 + $0x28] sm:$0xff] }
 0x33f   : > { %2090 = vmatmul.mubr.msk.f32.vlgmr.msra.gmra.mrb[10].mxu1 %vm1143_vm2, %v1184_v31  ;;  %2410 = vmatpush3.bf16.xpose.msra.mxu0 %v2409_v28 }
 0x340   : > { %2092 = vmatprep.mubr.msk.f32.mxu1 %vm1143_vm2, %v1185_v32  ;;  %2383 = vmatpush3.bf16.msra.mxu1 %v2382_v29  ;;  %v1430_v29 = vld [vmem:[%s3276_s1 + $0x20] sm:$0xff]  ;;  %v1432_v32 = vld [vmem:[%s3276_s1 + $0x30] sm:$0xff] }
 0x341   : > { %2384 = vmatprep.subr.bf16.mxu1 %v2548_v36  ;;  %2411 = vmatprep.subr.bf16.mxu0 %v2548_v36  ;;  %v2412_v31 = vpack.c.bf16 %v1431_v30, %v1430_v29 }
 0x343   : > { %2093 = vmatmul.mubr.msk.f32.gmra.mrb[12].mxu1 %vm1143_vm2, %v1186_v33  ;;  %v1433_v33 = vld [vmem:[%s3276_s1 + $0x38] sm:$0xff] }
 0x344   : > { %2386 = vmatpush3.bf16.msra.mxu1 %v2385_v37  ;;  %2127 = vmatprep.mubr.msk.f32.mxu1 %vm2549_vm0, %v2550_v55  ;;  %v1307_v55 = vld [vmem:[%s3279_s4 + $0x3b8] sm:$0xff]  ;;  %v2415_v34 = vpack.c.bf16 %v1433_v33, %v1432_v32  ;;  %v1435_v37 = vld [vmem:[%s3276_s1 + $0x48] sm:$0xff] }
 0x345   : > { %2387 = vmatprep.subr.bf16.mxu1 %v2548_v36  ;;  %v2391_v49 = vpack.c.bf16 %v1307_v55, %v1306_v47  ;;  %v2418_v38 = vpack.c.bf16 %v1435_v37, %v1434_v35 }
 0x347   : > { %2413 = vmatpush3.bf16.xpose.msra.mxu0 %v2412_v31 }
 0x348   : > { %2389 = vmatpush3.bf16.msra.mxu1 %v2388_v46  ;;  %2414 = vmatprep.subr.bf16.mxu0 %v2548_v36 }
 0x349   : > { %2390 = vmatprep.subr.bf16.mxu1 %v2548_v36 }
 0x34c   : > { %2392 = vmatpush3.bf16.msra.mxu1 %v2391_v49 }
 0x34d   : > { %2393 = vmatprep.subr.bf16.mxu1 %v2548_v36 }
 0x34f   : > { %2416 = vmatpush3.bf16.xpose.msra.mxu0 %v2415_v34 }
 0x350   : > { %2395 = vmatpush3.bf16.msra.mxu1 %v2394_v52  ;;  %2417 = vmatprep.subr.bf16.mxu0 %v2548_v36  ;;  %v2421_v52 = vpack.c.bf16 %v1437_v51, %v1436_v50 }
 0x351   : > { %2396 = vmatprep.subr.bf16.mxu1 %v2548_v36 }
 0x354   : > { %2398 = vmatpush3.bf16.msra.mxu1 %v2397_v56  ;;  %v2424_v56 = vpack.c.bf16 %v1439_v54, %v1438_v53 }
 0x355   : > { %2399 = vmatprep.subr.bf16.mxu1 %v2548_v36 }
 0x357   : > { %2419 = vmatpush3.bf16.xpose.msra.mxu0 %v2418_v38 }
 0x358   : > { %2401 = vmatpush3.bf16.msra.mxu1 %v2400_v59  ;;  %2420 = vmatprep.subr.bf16.mxu0 %v2548_v36  ;;  %v2427_v59 = vpack.c.bf16 %v1441_v58, %v1440_v57 }
 0x359   : > { %2402 = vmatprep.subr.bf16.mxu1 %v2548_v36 }
 0x35c   : > { %2404 = vmatpush3.bf16.msra.mxu1 %v2403_v62 }
 0x35f   : > { %2422 = vmatpush3.bf16.xpose.msra.mxu0 %v2421_v52 }
 0x360   : > { %2423 = vmatprep.subr.bf16.mxu0 %v2548_v36 }
 0x367   : > { %2425 = vmatpush3.bf16.xpose.msra.mxu0 %v2424_v56 }
 0x368   : > { %2426 = vmatprep.subr.bf16.mxu0 %v2548_v36 }
 0x36f   : > { %2428 = vmatpush3.bf16.xpose.msra.mxu0 %v2427_v59 }
 0x412   : > { %v2091_v3 = vpop.f32.mrb[10].mxu1 }
 0x413   : > { %v1288_v48 = vmul.f32 %v2091_v3, %v1034_v1  ;;  %v1268_v5 = vpop.f32.mrb[11].mxu1  ;;  %v1411_v1 = vunpack.c.0.s8 %v1410_v61 }
 0x414   : > { %v1287_v6 = vmul.f32 %v1268_v5, %v1029_v2 }
 0x415   : > { %v1414_v36 = vsub.s32 %v1411_v1, %v2871_v41 }
 0x416   : > { %v1291_v9 = vadd.f32 %v1288_v48, %v1287_v6  ;;  %v2094_v10 = vpop.f32.mrb[12].mxu1  ;;  %v1404_v48 = vrot.slane %v3058_v4, 1 }
 0x417   : > { %v1290_v11 = vmul.f32 %v2094_v10, %v1044_v7  ;;  %v1278_v12 = vpop.f32.mrb[13].mxu1  ;;  %v1415_v2 = vrot.slane %v3058_v4, %v1414_v36 }
 0x418   : > { %v1289_v13 = vmul.f32 %v1278_v12, %v1039_v8 }
 0x419   : > { %v1422_v6 = vrot.slane %v1415_v2, %v1414_v36 }
 0x41a   : > { %v1292_v14 = vadd.f32 %v1291_v9, %v1289_v13 }
 0x41b   : > { %v1423_v9 = vcombine.high %v1422_v6, %v1422_v6 }
 0x41c   : > { %v1293_v15 = vadd.f32 %v1292_v14, %v1290_v11  ;;  %v1442_v11 = vld [vmem:[%s356_s19] sm:$0x1] }
 0x41e   : > { %v1294_v16 = vrot.slane %v1293_v15, 4 }
 0x420   : > { %v1295_v17 = vadd.f32 %v1294_v16, %v1293_v15 }
 0x422   : > { %v1296_v42 = vrot.slane %v1295_v17, 2 }
 0x424   : > { %v1297_v18 = vadd.f32 %v1296_v42, %v1295_v17 }
 0x426   : > { %v1298_v39 = vrot.slane %v1297_v18, 1 }
 0x428   : > { %v1299_v19 = vadd.f32 %v1298_v39, %v1297_v18 }
 0x42a   : > { %2128 = vmatmul.mubr.f32.vlgmr.msra.gmra.mrb[14].mxu1 %v1299_v19 }
 0x4fd   : > { %v1384_v21 = vpop.f32.mrb[14].mxu1 }
 0x4fe   : > { %v1385_v40 = vadd.f32 %v1384_v21, %v1316_v20  ;;  %v2129_v44 = vpop.f32.mrb[15].mxu1 }
 0x500   : > { %v1389_v23 = vsel %vm1388_vm3, %v1385_v40, 0.0 }
 0x501   : > { %1390 = vadd.xlane.f32.xlu0 %v1389_v23 }
 0x58e   : > { %v1391_v45 = vpop.xlane.xlu0 %1390 }
 0x58f   : > { %v1393_v46 = vmul.f32 0.0078125, %v1391_v45 }
 0x591   : > { %v1394_v47 = vsub.f32 %v1385_v40, %v1393_v46 }
 0x593   : > { %v1395_v55 = vmul.f32 %v1394_v47, %v1394_v47 }
 0x595   : > { %v1396_v49 = vsel %vm1388_vm3, %v1395_v55, 0.0 }
 0x596   : > { %1397 = vadd.xlane.f32.xlu0 %v1396_v49 }
 0x623   : > { %v1398_v62 = vpop.xlane.xlu0 %1397 }
 0x624   : > { %v1399_v63 = vmul.f32 0.0078125, %v1398_v62 }
 0x626   : > { %v1400_v0 = vadd.f32 1e-06, %v1399_v63 }
 0x628   : > { %2482 = vrsqrt.f32 %v1400_v0 }
 0x632   : > { %v2483_v3 = vpop.eup %2482 }
 0x633   : > { %v1402_v5 = vmul.f32 %v2483_v3, %v1394_v47 }
 0x635   : > { %v1403_v7 = vmul.f32 %v1402_v5, %v3058_v4 }
 0x637   : > { %v1406_v8 = vadd.f32 %v1404_v48, %v1403_v7 }
 0x639   : > { %v1407_v10 = vadd.f32 %v1406_v8, %v2971_v22 }
 0x63b   : > { %1408 = vst [vmem:[%s359_s26] sm:$0x1] %v1407_v10  ;;  %v1425_v41 = vmul.f32 %v1423_v9, %v1407_v10  ;;  %s2490_s26 = scalar_lea.vmem %s2489_s24, 32 }
 0x63c   : > { %p2492_p1 = scmp.lt.s32.totalorder %s2490_s26, %s2484_s13 }
 0x63d   : > { %2163 = vmatmul.mubr.f32.vlgmr.msra.gmra.mrb[12].mxu0 %v1425_v41 }
 0x63e   : > { %p2493_p2 = por %p2492_p1, %p2491_p0 }
 0x640   : > { %p2494_p3 = pnand %p2493_p2, %p2487_p13 }
 0x710   : > { %v1509_v4 = vpop.f32.mrb[12].mxu0 }
 0x711   : > { %v1510_v12 = vadd.f32 %v1509_v4, %v1442_v11  ;;  %v2164_v13 = vpop.f32.mrb[13].mxu0 }
 0x713   : > { %1513 = vst [vmem:[%s335_s21] sm:$0x1] %v1510_v12 }
 0x714   : > { %2497 = shalt.err (!%p2494_p3)
}
 0x715   : > { %s2498_s10 = scalar_lea.hbm %s3233_s23, 16  ;;  %s2502_s19 = scalar_lea.hbm %s3282_s7, 128 }
 0x716   : > { %p2499_p4 = scmp.ne.s32.totalorder %s3233_s23, %s2498_s10  ;;  %p2503_p9 = scmp.lt.u32.totalorder %s3233_s23, %s3282_s7 }
 0x717   : > { %p2504_p10 = scmp.lt.u32.totalorder %s2502_s19, %s2498_s10  ;;  %p2506_p12 = scmp.lt.u32.totalorder %s2498_s10, %s3233_s23 }
 0x718   : > { %p2500_p7 = pnand %p2499_p4, %p2636_p5 }
 0x719   : > { %p2505_p11 = por %p2504_p10, %p2503_p9 }
 0x71a   : > { %p2501_p8 = pneg %p2500_p7 }
 0x71b   : > { %p2507_p13 = por %p2506_p12, %p2505_p11 }
 0x71d   : > { %p2508_p0 = pnand %p2507_p13, %p2501_p8 }
 0x71f   : > { %2511 = shalt.err (!%p2508_p0)
}
 0x720   : > { %2429 = dma.vmem_to_hbm [thread:$0]  (%p2636_p5), %s3235_s2, 16, %s3233_s23, %s1515_s25  }
 0x721 PF: > { %p2435_p1 = scmp.ge.s32.totalorder %s2546_s30, 2  ;;  %s1545_s20 = sand.u32 1, %s2534_s27  }
 0x722   : > { %s1546_s22 = scalar_lea.sflag [#allocation3], %s1545_s20 }
 0x723   : > { %p2432_p2 = pnand %p2435_p1, %p2640_p6 }
 0x725   : > { %2529 = dma.done.wait (!%p2432_p2), %s1546_s22, 16  }
 0x726   : > { %2531 = vsyncadd (!%p2432_p2), %s1546_s22, 4294967280  ;;  %p19_p3 = scmp.ge.s32.totalorder %s2623_s11, 10   ;;  %s3288_s27 = smov %s2538_s28 }
 0x727   : > { %s3289_s28 = smov %s2542_s29  ;;  %s3290_s29 = smov %s2634_s14 }
 0x728   : > { %s3291_s30 = smov %s2623_s11  ;;  %21 = sbr.rel (!%p19_p3) target bundleno = 5 (0x5), region = 104 }
 0x72f   :  { %1556 = vsyncpa [#allocation3], 1 }
 0x730   :  { %1558 = vsyncpa [#allocation3 + $0x1], 1 }

</bundles_post_ra>
